<compile_context>
chip_gen: v7x
topology: tpu7x:2x2x1
jax: 0.10.0
libtpu: 0.0.40
codegen_flags: <defaults>
</compile_context>

<pallas_src>
import jax
import jax.numpy as jnp
from jax.experimental import pallas as pl
from jax.experimental.pallas import tpu as pltpu


def _round_up(x, m):
    return (x + m - 1) // m * m


def _cdiv(a, b):
    return (a + b - 1) // b


def user_context_kernel(idx_ref, fused_ref, o_ref):
    # idx_ref:   (TB, F)          int32   VMEM
    # fused_ref: (F*Vpad, Cpad)   bf16    VMEM  (tables pre-fused with Linear)
    # o_ref:     (TB, Cpad)       float32 VMEM  (lane-dense, Cpad % 128 == 0)
    idx = idx_ref[...]                                   # (TB, F)
    TB, F = idx.shape
    FV, Cpad = fused_ref.shape
    Vpad = FV // F

    # Keep any out-of-range index inside its own zero-padded slab so it can
    # never bleed into another feature's rows (nn.Embedding would error here).
    idx = jnp.clip(idx, 0, Vpad - 1)

    # Single hoisted (TB, Vpad) iota, reused for every feature slab.
    iota = jax.lax.broadcasted_iota(jnp.int32, (TB, Vpad), 1)

    # Per-slab one-hot compares in f32 (native VALU select on all chip
    # generations), lane-axis concatenate into the combined multi-hot, then a
    # single late cast to bf16 (0/1 are exact in bf16).
    slabs = []
    for i in range(F):                        # F is tiny & static -> unrolled
        ids = idx[:, i].reshape(TB, 1)                    # (TB, 1)
        slabs.append((iota == ids).astype(jnp.float32))   # (TB, Vpad)
    onehot = jnp.concatenate(slabs, axis=1).astype(jnp.bfloat16)  # (TB, F*Vpad)

    # One bf16 MXU push, f32 accumulate: (TB, F*Vpad) @ (F*Vpad, Cpad).
    o_ref[...] = jnp.dot(onehot, fused_ref[...],
                         preferred_element_type=jnp.float32)


def build_fused_table(tables, W, vpad, cpad):
    """Pre-fuse per-feature embedding tables with the Linear weight (plain XLA).

    tables: list of (V_i, D) float32
    W:      (C, F*D) float32   (nn.Linear weight, no bias)
    vpad:   rows per feature slab (multiple of 128)
    cpad:   padded output channels (multiple of 128, lane-dense stores)
    returns (F*vpad, cpad) bfloat16; feature i occupies rows [i*vpad, i*vpad+V_i),
    columns [0, C); everything else is zero.
    """
    F = len(tables)
    D = tables[0].shape[1]
    C = W.shape[0]
    fused = jnp.zeros((F * vpad, cpad), jnp.float32)
    for i, t in enumerate(tables):
        w_i = W[:, i * D:(i + 1) * D]        # (C, D)
        f_i = t @ w_i.T                      # (V_i, C)
        fused = fused.at[i * vpad:i * vpad + t.shape[0], :C].set(f_i)
    return fused.astype(jnp.bfloat16)


def user_context_forward(idx, fused, out_channels, *, block_b=256):
    """idx: (B, F) int32; fused: (F*Vpad, Cpad) bf16 from build_fused_table.

    Returns (B, out_channels) float32.
    """
    B, F = idx.shape
    FV, Cpad = fused.shape
    Vpad = FV // F

    # Batch tile (multiple of 8 sublanes).
    TB = min(block_b, _round_up(B, 8))
    # v7x has 2 TensorCores: make sure the "parallel" batch axis has >= 2 grid
    # steps when there is enough batch to split (neutral on v5e/v6e).
    if B > 8 and _cdiv(_round_up(B, 8), TB) < 2:
        TB = _round_up(_cdiv(B, 2), 8)
    Bp = _round_up(B, TB)
    if Bp != B:
        # Padded rows use index 0; their (garbage) outputs are sliced off below.
        idx = jnp.pad(idx, ((0, Bp - B), (0, 0)))

    # Explicit VMEM budget: resident fused slab (single-buffered) +
    # double-buffered idx/out blocks + in-kernel iota/one-hot intermediates.
    vmem_need = (FV * Cpad * 2
                 + 2 * (TB * F * 4 + TB * Cpad * 4)
                 + TB * Vpad * 4 + TB * FV * (4 + 2))
    vmem_limit = min(max(2 * vmem_need, 16 * 1024 * 1024), 32 * 1024 * 1024)

    cost = pl.CostEstimate(
        flops=2 * Bp * FV * Cpad,
        transcendentals=0,
        bytes_accessed=int(Bp * F * 4 + FV * Cpad * 2 + Bp * Cpad * 4),
    )

    out = pl.pallas_call(
        user_context_kernel,
        out_shape=jax.ShapeDtypeStruct((Bp, Cpad), jnp.float32),
        grid_spec=pltpu.PrefetchScalarGridSpec(
            num_scalar_prefetch=0,
            grid=(Bp // TB,),
            in_specs=[
                pl.BlockSpec((TB, F), lambda b: (b, 0)),
                # Grid-invariant weight: keep it resident, single-buffered.
                pl.BlockSpec((FV, Cpad), lambda b: (0, 0),
                             pipeline_mode=pl.Buffered(1)),
            ],
            out_specs=pl.BlockSpec((TB, Cpad), lambda b: (b, 0)),
        ),
        compiler_params=pltpu.CompilerParams(
            dimension_semantics=("parallel",),       # shard batch across TCs (v7x)
            vmem_limit_bytes=int(vmem_limit)),
        cost_estimate=cost,
    )(idx, fused)
    return out[:B, :out_channels]


if __name__ == "__main__":
    # Small shapes consistent with the module.
    embedding_dim = 32                 # D
    output_channels = 16               # C
    num_embeddings = [10, 7, 5]        # per-feature vocab sizes
    F = len(num_embeddings)
    B = 8
    VPAD = _round_up(max(num_embeddings), 128)   # 128-lane slab per feature
    CPAD = _round_up(output_channels, 128)       # lane-dense output channels

    key = jax.random.PRNGKey(0)
    keys = jax.random.split(key, F + 2)

    # Deterministic synthetic parameters (not a checkpoint load).
    tables = [jax.random.normal(keys[i], (v, embedding_dim), jnp.float32)
              for i, v in enumerate(num_embeddings)]
    # nn.Linear weight W: (C, F*D), no bias.
    W = jax.random.normal(keys[F], (output_channels, F * embedding_dim),
                          jnp.float32) * 0.1

    # Input indices (B, F), each column bounded by its vocab size.
    sub = jax.random.split(keys[F + 1], F)
    idx = jnp.concatenate(
        [jax.random.randint(sub[i], (B, 1), 0, v, jnp.int32)
         for i, v in enumerate(num_embeddings)], axis=1)

    # Pre-fuse tables with the Linear (plain XLA, outside the kernel).
    fused = build_fused_table(tables, W, VPAD, CPAD)     # (F*VPAD, CPAD) bf16

    out = user_context_forward(idx, fused, output_channels)
    out = jax.block_until_ready(out)

    # Reference 1: exact pipeline through the bf16-fused table (checks the
    # kernel's per-slab one-hot + single matmul up to f32 add order).
    fused_f32 = fused.astype(jnp.float32)
    ref_fused = sum(fused_f32[i * VPAD + idx[:, i], :output_channels]
                    for i in range(F))

    # Reference 2: full-precision module semantics (only bf16 rounding of the
    # fused table separates the two -> relaxed tolerance).
    embs = [jnp.take(tables[i], idx[:, i], axis=0) for i in range(F)]
    ref_full = jnp.concatenate(embs, axis=1) @ W.T

    assert out.shape == (B, output_channels)
    assert jnp.allclose(out, ref_fused, atol=1e-5, rtol=1e-5), \
        "mismatch vs bf16-fused reference"
    assert jnp.allclose(out, ref_full, atol=5e-2, rtol=5e-2), \
        "mismatch vs full-precision reference"
    print("KERNEL_OK")
</pallas_src>

<mosaic_0001>
module attributes {stable_mosaic.version = 11 : i64} {
  func.func @user_context_kernel(%arg0: i32, %arg1: memref<8x3xi32, #tpu.memory_space<vmem>>, %arg2: memref<384x128xbf16, #tpu.memory_space<vmem>>, %arg3: memref<8x128xf32, #tpu.memory_space<vmem>>) attributes {dimension_semantics = [#tpu.dimension_semantics<parallel>], iteration_bounds = array<i64: 1>, scalar_prefetch = 0 : i64, scratch_operands = 0 : i64, tpu.core_type = #tpu.core_type<tc>, window_params = [{transform_indices = @transform_0, window_bounds = array<i64: 8, 3>}, {pipeline_mode = #tpu.pipeline_mode<synchronous>, transform_indices = @transform_1, window_bounds = array<i64: 384, 128>}, {transform_indices = @transform_2, window_bounds = array<i64: 8, 128>}]} {
    %c0 = arith.constant 0 : index
    %c0_0 = arith.constant 0 : index
    %0 = vector.load %arg1[%c0, %c0_0] : memref<8x3xi32, #tpu.memory_space<vmem>>, vector<8x3xi32>
    %c0_i32 = arith.constant 0 : i32
    %c127_i32 = arith.constant 127 : i32
    %1 = vector.broadcast %c0_i32 : i32 to vector<8x3xi32>
    %2 = arith.maxsi %1, %0 : vector<8x3xi32>
    %3 = vector.broadcast %c127_i32 : i32 to vector<8x3xi32>
    %4 = arith.minsi %3, %2 : vector<8x3xi32>
    %5 = tpu.iota {dimensions = array<i32: 1>} : vector<8x128xi32>
    %6 = vector.extract_strided_slice %4 {offsets = [0, 0], sizes = [8, 1], strides = [1, 1]} : vector<8x3xi32> to vector<8x1xi32>
    %7 = vector.shape_cast %6 : vector<8x1xi32> to vector<8xi32>
    %8 = vector.shape_cast %7 : vector<8xi32> to vector<8x1xi32>
    %9 = vector.broadcast %8 : vector<8x1xi32> to vector<8x128xi32>
    %10 = arith.cmpi eq, %5, %9 : vector<8x128xi32>
    %11 = arith.extui %10 : vector<8x128xi1> to vector<8x128xi32>
    %12 = arith.sitofp %11 : vector<8x128xi32> to vector<8x128xf32>
    %13 = vector.extract_strided_slice %4 {offsets = [0, 1], sizes = [8, 1], strides = [1, 1]} : vector<8x3xi32> to vector<8x1xi32>
    %14 = vector.shape_cast %13 : vector<8x1xi32> to vector<8xi32>
    %15 = vector.shape_cast %14 : vector<8xi32> to vector<8x1xi32>
    %16 = vector.broadcast %15 : vector<8x1xi32> to vector<8x128xi32>
    %17 = arith.cmpi eq, %5, %16 : vector<8x128xi32>
    %18 = arith.extui %17 : vector<8x128xi1> to vector<8x128xi32>
    %19 = arith.sitofp %18 : vector<8x128xi32> to vector<8x128xf32>
    %20 = vector.extract_strided_slice %4 {offsets = [0, 2], sizes = [8, 1], strides = [1, 1]} : vector<8x3xi32> to vector<8x1xi32>
    %21 = vector.shape_cast %20 : vector<8x1xi32> to vector<8xi32>
    %22 = vector.shape_cast %21 : vector<8xi32> to vector<8x1xi32>
    %23 = vector.broadcast %22 : vector<8x1xi32> to vector<8x128xi32>
    %24 = arith.cmpi eq, %5, %23 : vector<8x128xi32>
    %25 = arith.extui %24 : vector<8x128xi1> to vector<8x128xi32>
    %26 = arith.sitofp %25 : vector<8x128xi32> to vector<8x128xf32>
    %27 = tpu.concatenate %12, %19, %26 in 1 : vector<8x128xf32>, vector<8x128xf32>, vector<8x128xf32> -> vector<8x384xf32>
    %28 = arith.truncf %27 : vector<8x384xf32> to vector<8x384xbf16>
    %c0_1 = arith.constant 0 : index
    %c0_2 = arith.constant 0 : index
    %29 = vector.load %arg2[%c0_1, %c0_2] : memref<384x128xbf16, #tpu.memory_space<vmem>>, vector<384x128xbf16>
    %cst = arith.constant dense<0.000000e+00> : vector<8x128xf32>
    %30 = tpu.matmul %28, %29, %cst {dimension_numbers = #tpu.dot_dimension_numbers<[1], [0], [0], [1], [0, 0, 1, 1], [], []>} : vector<8x384xbf16>, vector<384x128xbf16>, vector<8x128xf32> -> vector<8x128xf32>
    %c0_3 = arith.constant 0 : index
    %c0_4 = arith.constant 0 : index
    %31 = vector.load %arg3[%c0_3, %c0_4] : memref<8x128xf32, #tpu.memory_space<vmem>>, vector<8x128xf32>
    tpu.vector_store %arg3[%c0_3, %c0_4], %30 {strides = array<i32>} : memref<8x128xf32, #tpu.memory_space<vmem>>, vector<8x128xf32>,
    return
  }
  func.func @transform_0(%arg0: i32) -> (i32, i32) {
    %c0_i32 = arith.constant 0 : i32
    %c0_i32_0 = arith.constant 0 : i32
    return %arg0, %c0_i32 : i32, i32
  }
  func.func @transform_1(%arg0: i32) -> (i32, i32) {
    %c0_i32 = arith.constant 0 : i32
    %c0_i32_0 = arith.constant 0 : i32
    %c0_i32_1 = arith.constant 0 : i32
    return %c0_i32, %c0_i32_0 : i32, i32
  }
  func.func @transform_2(%arg0: i32) -> (i32, i32) {
    %c0_i32 = arith.constant 0 : i32
    %c0_i32_0 = arith.constant 0 : i32
    return %arg0, %c0_i32 : i32, i32
  }
}

</mosaic_0001>

<bundles_post_ra>
// kernel: tpu_custom_call.1
= control target key start
LH: loop header
LB: loop body
LE: loop exit
PB: predicated region body
PF: predicated region fallthrough
CT: control target
= control target key end

     0   :  { %7 = vsyncpa [#allocation3], 0  ;;  %s574_s0 = inlined_call_operand.vmem [shape: s32[8,3], index: 0, kind: input, shape index: {}]   ;;  %s575_s1 = inlined_call_operand.hbm [shape: bf16[384,128], index: 1, kind: input, shape index: {}]   ;;  %s576_s2 = inlined_call_operand.hbm [shape: f32[8,128], index: 2, kind: output, shape index: {}]  }
   0x1   :  { %8 = vsyncpa [#allocation4], 0  ;;  %s513_s9 = smov [#allocation2]   ;;  %s465_s13 = scalar_lea.hbm %s575_s1, 3072 }
   0x2   :  { %s16_s10 = sshll.u32 %s513_s9, 4  ;;  %p466_p0 = scmp.ne.s32.totalorder %s575_s1, %s465_s13  ;;  %s17_s10 = int_to_ptr.vmem [resolvable:$true] %s16_s10 }
   0x3   :  { %p469_p1 = scmp.lt.u32.totalorder %s465_s13, %s575_s1 }
   0x5   :  { %p471_p2 = pnand %p469_p1, %p466_p0 }
   0x7   :  { %474 = shalt.err (!%p471_p2)
}
   0x8   :  { %s475_s18 = scalar_lea.vmem %s17_s10, 3072  ;;  %p480_p4 = scmp.lt.s32.totalorder %s17_s10, %s17_s10 }
   0x9   :  { %p476_p3 = scmp.ne.s32.totalorder %s17_s10, %s475_s18  ;;  %p481_p5 = scmp.lt.s32.totalorder %s475_s18, %s475_s18 }
   0xb   :  { %p482_p6 = por %p481_p5, %p480_p4 }
   0xd   :  { %p483_p7 = pnand %p482_p6, %p476_p3 }
   0xf   :  { %486 = shalt.err (!%p483_p7)
}
  0x10   :  { %s514_s19 = smov 64   ;;  %s515_s20 = smov 4  }
  0x11   :  { %22 = dma.hbm_to_vmem [thread:$0]  %s575_s1, 3072, %s17_s10, [#allocation3], %s514_s19, %s514_s19, %s515_s20  }
  0x12   :  { %509 = dma.done.wait [#allocation3], 3072  }
  0x13   :  { %510 = vsyncadd [#allocation3], 4294964224  ;;  %v516_v0 = vmov 1   ;;  %v517_v1 = vmov 2   ;;  %v518_v2 = vmov 0.0   ;;  %v27_v3 = vld [vmem:[%s574_s0] sm:$0xff]  ;;  %v32_v31 = vlaneseq }
  0x14   :  { %437 = vset.pattern.permute.xlu0 %v516_v0  ;;  %439 = vset.pattern.permute.xlu1 %v517_v1  ;;  %vm28_vm0 = vcmp.gt.s32.totalorder %v27_v3, 0  ;;  %v441_v4 = vld [vmem:[#allocation2 + $0x40] sm:$0xff]   ;;  %v444_v9 = vld [vmem:[#allocation2 + $0x48] sm:$0xff]   ;;  %v447_v12 = vld [vmem:[#allocation2 + $0x50] sm:$0xff]   ;;  %v519_v14 = vmov 0   ;;  %vm520_vm2 = vmmov 0  }
  0x15   :  { %407 = vmatprep.subr.bf16.mxu1 %v518_v2  ;;  %v29_v5 = vsel %vm28_vm0, %v27_v3, 0  ;;  %v442_v6 = vld [vmem:[#allocation2] sm:$0xff]   ;;  %376 = vmatprep.subr.bf16.mxu0 %v441_v4  ;;  %v445_v10 = vld [vmem:[#allocation2 + $0x8] sm:$0xff]   ;;  %v448_v13 = vld [vmem:[#allocation2 + $0x10] sm:$0xff]   ;;  %v33_v32 = vand.u32 127, %v32_v31  ;;  %s522_s0 = smov [#allocation5]  }
  0x16   :  { %vm30_vm1 = vcmp.lt.s32.totalorder %v29_v5, 127  ;;  %v443_v7 = vld [vmem:[#allocation2 + $0x80] sm:$0xff]   ;;  %377 = vmatpush3.bf16.msra.mxu0 %v442_v6  ;;  %v446_v11 = vld [vmem:[#allocation2 + $0x88] sm:$0xff]   ;;  %v449_v15 = vld [vmem:[#allocation2 + $0x90] sm:$0xff]   ;;  %423 = vmatprep.mubr.msk.bf16.mxu1 %vm520_vm2, %v518_v2  ;;  %v521_v35 = vmov 1.0|1.0  }
  0x17   :  { %v31_v8 = vsel %vm30_vm1, %v29_v5, 127  ;;  %408 = vmatpush3.bf16.msra.mxu1 %v443_v7  ;;  %378 = vmatprep.subr.bf16.mxu0 %v444_v9  ;;  %v450_v16 = vld [vmem:[#allocation2 + $0x58] sm:$0xff]   ;;  %v453_v18 = vld [vmem:[#allocation2 + $0x60] sm:$0xff]   ;;  %v456_v21 = vld [vmem:[#allocation2 + $0x68] sm:$0xff]   ;;  %s334_s1 = sshll.u32 %s522_s0, 4  ;;  %s335_s1 = int_to_ptr.vmem [resolvable:$true] %s334_s1 }
  0x18   :  { %41 = vperm.xlu0 %437, %v31_v8   ;;  %47 = vperm.xlu1 %439, %v31_v8   ;;  %v451_v17 = vld [vmem:[#allocation2 + $0x18] sm:$0xff]   ;;  %v454_v20 = vld [vmem:[#allocation2 + $0x20] sm:$0xff]   ;;  %v457_v23 = vld [vmem:[#allocation2 + $0x28] sm:$0xff]   ;;  %s487_s25 = scalar_lea.vmem %s335_s1, 128  ;;  %p492_p9 = scmp.lt.s32.totalorder %s335_s1, %s335_s1 }
  0x19   :  { %409 = vmatprep.subr.bf16.mxu1 %v518_v2  ;;  %v452_v19 = vld [vmem:[#allocation2 + $0x98] sm:$0xff]   ;;  %v455_v22 = vld [vmem:[#allocation2 + $0xa0] sm:$0xff]   ;;  %v458_v24 = vld [vmem:[#allocation2 + $0xa8] sm:$0xff]   ;;  %p488_p8 = scmp.ne.s32.totalorder %s335_s1, %s487_s25  ;;  %p493_p10 = scmp.lt.s32.totalorder %s487_s25, %s487_s25 }
  0x1a   :  { %379 = vmatpush3.bf16.msra.mxu0 %v445_v10  ;;  %v459_v25 = vld [vmem:[#allocation2 + $0x70] sm:$0xff]   ;;  %v462_v27 = vld [vmem:[#allocation2 + $0x78] sm:$0xff]  }
  0x1b   :  { %380 = vmatprep.subr.bf16.mxu0 %v447_v12  ;;  %410 = vmatpush3.bf16.msra.mxu1 %v446_v11  ;;  %v460_v26 = vld [vmem:[#allocation2 + $0x30] sm:$0xff]   ;;  %v463_v29 = vld [vmem:[#allocation2 + $0x38] sm:$0xff]   ;;  %p494_p11 = por %p493_p10, %p492_p9 }
  0x1c   :  { %438 = vset.pattern.permute.xlu0 %v519_v14  ;;  %411 = vmatprep.subr.bf16.mxu1 %v518_v2  ;;  %v461_v28 = vld [vmem:[#allocation2 + $0xb0] sm:$0xff]   ;;  %v464_v30 = vld [vmem:[#allocation2 + $0xb8] sm:$0xff]  }
  0x1d   :  { %35 = vperm.xlu0 %438, %v31_v8   ;;  %p495_p12 = pnand %p494_p11, %p488_p8 }
  0x1e   :  { %381 = vmatpush3.bf16.msra.mxu0 %v448_v13 }
  0x1f   :  { %382 = vmatprep.subr.bf16.mxu0 %v450_v16  ;;  %412 = vmatpush3.bf16.msra.mxu1 %v449_v15 }
  0x20   :  { %413 = vmatprep.subr.bf16.mxu1 %v518_v2 }
  0x21   :  { %440 = vset.pattern.permute.xlu0 %v517_v1 }
  0x22   :  { %383 = vmatpush3.bf16.msra.mxu0 %v451_v17 }
  0x23   :  { %384 = vmatprep.subr.bf16.mxu0 %v453_v18  ;;  %414 = vmatpush3.bf16.msra.mxu1 %v452_v19 }
  0x24   :  { %415 = vmatprep.subr.bf16.mxu1 %v518_v2 }
  0x26   :  { %385 = vmatpush3.bf16.msra.mxu0 %v454_v20 }
  0x27   :  { %386 = vmatprep.subr.bf16.mxu0 %v456_v21  ;;  %416 = vmatpush3.bf16.msra.mxu1 %v455_v22 }
  0x28   :  { %417 = vmatprep.subr.bf16.mxu1 %v518_v2 }
  0x2a   :  { %387 = vmatpush3.bf16.msra.mxu0 %v457_v23 }
  0x2b   :  { %388 = vmatprep.subr.bf16.mxu0 %v459_v25  ;;  %418 = vmatpush3.bf16.msra.mxu1 %v458_v24 }
  0x2c   :  { %419 = vmatprep.subr.bf16.mxu1 %v518_v2 }
  0x2e   :  { %389 = vmatpush3.bf16.msra.mxu0 %v460_v26 }
  0x2f   :  { %390 = vmatprep.subr.bf16.mxu0 %v462_v27  ;;  %420 = vmatpush3.bf16.msra.mxu1 %v461_v28 }
  0x30   :  { %421 = vmatprep.subr.bf16.mxu1 %v518_v2 }
  0x32   :  { %391 = vmatpush3.bf16.msra.mxu0 %v463_v29 }
  0x33   :  { %422 = vmatpush3.bf16.msra.mxu1 %v464_v30 }
  0x97   :  { %v42_v33 = vpop.permute.xlu0 %41  ;;  %v48_v34 = vpop.permute.xlu1 %47 }
  0x98   :  { %vm43_vm3 = vcmp.eq.s32.totalorder %v33_v32, %v42_v33  ;;  %vm49_vm4 = vcmp.eq.s32.totalorder %v33_v32, %v48_v34 }
  0x99   :  { %vm370_vm5 = vmpackc.low %vm43_vm3, %vm43_vm3 }
  0x9a   :  { %371 = vmatprep.mubr.msk.bf16.mxu0 %vm370_vm5, %v521_v35  ;;  %vm374_vm6 = vmpackc.low %vm49_vm4, %vm49_vm4 }
  0x9b   :  { %424 = vmatmul.mubr.msk.bf16.vlgmr.msra.gmra.mrb[0].mxu1 %vm374_vm6, %v521_v35 }
  0x9c   :  { %v36_v36 = vpop.permute.xlu0 %35 }
  0x9d   :  { %vm37_vm7 = vcmp.eq.s32.totalorder %v33_v32, %v36_v36 }
  0x9e   :  { %vm372_vm8 = vmpackc.low %vm37_vm7, %vm37_vm7 }
  0x9f   :  { %373 = vmatmul.mubr.msk.bf16.vlgmr.msra.gmra.mrb[0].mxu0 %vm372_vm8, %v521_v35 }
 0x16e   :  { %v321_v37 = vpop.f32.mrb[0].mxu1 }
 0x16f   :  { %v425_v38 = vpop.f32.mrb[1].mxu1 }
 0x170   :  { %v324_v39 = vpop.f32.mrb[2].mxu1 }
 0x171   :  { %v426_v40 = vpop.f32.mrb[3].mxu1 }
 0x172   :  { %v392_v41 = vpop.f32.mrb[0].mxu0 }
 0x173   :  { %v393_v42 = vpop.f32.mrb[1].mxu0 }
 0x174   :  { %v394_v43 = vadd.f32 %v393_v42, %v392_v41  ;;  %v395_v44 = vpop.f32.mrb[2].mxu0 }
 0x175   :  { %v396_v45 = vpop.f32.mrb[3].mxu0 }
 0x176   :  { %v322_v46 = vadd.f32 %v394_v43, %v321_v37 }
 0x178   :  { %327 = vst [vmem:[#allocation5] sm:$0xff] %v322_v46 }
 0x179   :  { %498 = shalt.err (!%p495_p12)
}
 0x17a   :  { %s499_s28 = scalar_lea.hbm %s576_s2, 128 }
 0x17b   :  { %p500_p13 = scmp.ne.s32.totalorder %s576_s2, %s499_s28  ;;  %p503_p0 = scmp.lt.u32.totalorder %s499_s28, %s576_s2 }
 0x17d   :  { %p505_p1 = pnand %p503_p0, %p500_p13 }
 0x17f   :  { %508 = shalt.err (!%p505_p1)
}
 0x180   :  { %337 = dma.vmem_to_hbm [thread:$0]  %s335_s1, 128, %s576_s2, [#allocation4]  }
 0x181   :  { %511 = dma.done.wait [#allocation4], 128  }
 0x182   :  { %512 = vsyncadd [#allocation4], 4294967168 }
 0x183   :  { %341 = vsyncpa [#allocation3], 1 }
 0x184   :  { %342 = vsyncpa [#allocation4], 1 }

</bundles_post_ra>
